<compile_context>
chip_gen: v5e
topology: v5e:2x2
jax: 0.10.0
libtpu: 0.0.40
codegen_flags: <defaults>
</compile_context>

<pallas_src>
import functools

import jax
import jax.numpy as jnp
from jax.experimental import pallas as pl
from jax.experimental.pallas import tpu as pltpu


_PACK = 8                       # original rows packed per lane-dense row
_F_IN = 13                      # input features
_F_OUT = 2                      # output classes
_PK_IN = _PACK * _F_IN          # 104 packed input lanes
_PK_OUT = _PACK * _F_OUT        # 16 packed output lanes


def _round_up(a: int, b: int) -> int:
    return ((a + b - 1) // b) * b


def _kernel_train(x_ref, w1_ref, b1_ref, wp_ref, bp_ref, out_ref):
    # x_ref: (TMP, 104) packed rows; weights are block-diagonal replicas.
    h = jnp.dot(x_ref[...], w1_ref[...],
                preferred_element_type=jnp.float32) + b1_ref[...]
    h = jnp.maximum(h, 0.0)
    out_ref[...] = (jnp.dot(h, wp_ref[...],
                            preferred_element_type=jnp.float32)
                    + bp_ref[...]).astype(out_ref.dtype)


def _kernel_eval(x_ref, w1_ref, b1_ref, wp_ref, bp_ref,
                 wps_ref, bps_ref, out_ref):
    h = jnp.dot(x_ref[...], w1_ref[...],
                preferred_element_type=jnp.float32) + b1_ref[...]
    h = jnp.maximum(h, 0.0)
    logits = jnp.dot(h, wp_ref[...],
                     preferred_element_type=jnp.float32) + bp_ref[...]
    # Partner logit of each (l0, l1) pair via column-swapped block-diag weights
    # (avoids any cross-lane shuffle; MXU has huge slack here).
    partner = jnp.dot(h, wps_ref[...],
                      preferred_element_type=jnp.float32) + bps_ref[...]
    m = jnp.maximum(logits, partner)
    e = jnp.exp(logits - m)
    # Exact divide (kernel is nowhere near VPU/EUP bound) -> matches torch softmax.
    out_ref[...] = (e / (e + jnp.exp(partner - m))).astype(out_ref.dtype)


@functools.partial(jax.jit, static_argnames=("phase", "block_rows"))
def dist_psn_13features(x, w1, b1, wp, bp, *, phase="train", block_rows=32768):
    """x: (N, 13); weights stored as (in_features, out_features).

    Returns (N, 2) float32 logits (softmaxed over dim=1 if phase == 'eval').
    `block_rows`: batch tile size in *original* rows (internally /8 packed).
    """
    n, f = x.shape
    assert f == _F_IN, f"expected {_F_IN} features, got {f}"

    # Mirror torch `x.float()`; keep everything f32 (no bf16 round trips).
    x = x.astype(jnp.float32)
    w1 = w1.astype(jnp.float32)
    wp = wp.astype(jnp.float32)
    b1 = b1.astype(jnp.float32).reshape(1, _F_IN)
    bp = bp.astype(jnp.float32).reshape(1, _F_OUT)

    # Lane-dense repack: (N,13) -> (N/8, 104) is a free row-major bitcast when
    # N % 8 == 0; otherwise one tiny pad-to-8 copy (keep producers 8-aligned).
    n8 = _round_up(n, _PACK)
    if n8 != n:
        x = jnp.pad(x, ((0, n8 - n), (0, 0)))
    np_ = n8 // _PACK
    xp = x.reshape(np_, _PK_IN)

    # Block-diagonal weights so the matmuls run directly on the packed layout.
    eye = jnp.eye(_PACK, dtype=jnp.float32)
    w1_bd = jnp.kron(eye, w1)                 # (104, 104)
    b1_bd = jnp.tile(b1, (1, _PACK))          # (1, 104)
    wp_bd = jnp.kron(eye, wp)                 # (104, 16)
    bp_bd = jnp.tile(bp, (1, _PACK))          # (1, 16)

    eval_phase = (phase == "eval")

    # Batch tile (in packed rows): >= ~1.7 MiB useful x bytes per step by
    # default, shrunk so the grid has >= ~8 steps (megacore + pipelining),
    # always a multiple of 8 packed rows (or the full array dim).
    desired = _round_up(max(int(block_rows) // _PACK, 8), 8)
    tmp = min(desired, max(8, _round_up(pl.cdiv(np_, 8), 8)))
    if tmp >= np_:
        tmp = np_                              # single block covers everything
    grid = (pl.cdiv(np_, tmp),)                # ragged last block is fine

    x_spec = pl.BlockSpec((tmp, _PK_IN), lambda i: (i, 0))
    w1_spec = pl.BlockSpec((_PK_IN, _PK_IN), lambda i: (0, 0))
    b1_spec = pl.BlockSpec((1, _PK_IN), lambda i: (0, 0))
    wp_spec = pl.BlockSpec((_PK_IN, _PK_OUT), lambda i: (0, 0))
    bp_spec = pl.BlockSpec((1, _PK_OUT), lambda i: (0, 0))

    in_specs = [x_spec, w1_spec, b1_spec, wp_spec, bp_spec]
    args = [xp, w1_bd, b1_bd, wp_bd, bp_bd]
    if eval_phase:
        wp_sw = wp[:, ::-1]
        bp_sw = bp[:, ::-1]
        args += [jnp.kron(eye, wp_sw), jnp.tile(bp_sw, (1, _PACK))]
        in_specs += [pl.BlockSpec((_PK_IN, _PK_OUT), lambda i: (0, 0)),
                     pl.BlockSpec((1, _PK_OUT), lambda i: (0, 0))]
        kernel = _kernel_eval
    else:
        kernel = _kernel_train

    macs = _PK_IN * _PK_IN + _PK_IN * _PK_OUT * (2 if eval_phase else 1)
    vec_ops = 2 * _PK_IN + (6 * _PK_OUT if eval_phase else _PK_OUT)
    weight_bytes = 4 * (_PK_IN * _PK_IN + _PK_IN
                        + (_PK_IN * _PK_OUT + _PK_OUT) * (2 if eval_phase else 1))
    cost = pl.CostEstimate(
        flops=int(np_ * (2 * macs + vec_ops)),
        transcendentals=int(2 * _PK_OUT * np_) if eval_phase else 0,
        bytes_accessed=int(np_ * (_PK_IN + _PK_OUT) * 4 + weight_bytes),
    )

    out_p = pl.pallas_call(
        kernel,
        out_shape=jax.ShapeDtypeStruct((np_, _PK_OUT), jnp.float32),
        grid=grid,
        in_specs=in_specs,
        out_specs=pl.BlockSpec((tmp, _PK_OUT), lambda i: (i, 0)),
        compiler_params=pltpu.CompilerParams(
            dimension_semantics=("parallel",)),   # shard batch across TCs (v7x)
        cost_estimate=cost,
    )(*args)

    out = out_p.reshape(n8, _F_OUT)               # free row-major bitcast
    return out if n8 == n else out[:n]

    # TODO(synk): fc2 is defined in the PyTorch __init__ but never used in
    # forward, so it is intentionally not implemented here.


def _xavier_uniform(key, shape):
    # shape = (in_features, out_features); matches torch xavier_uniform_ gain=1.
    fan_in, fan_out = shape
    limit = jnp.sqrt(6.0 / (fan_in + fan_out))
    return jax.random.uniform(key, shape, jnp.float32, -limit, limit)


def _linear_default_bias(key, in_features, out_features):
    # torch default Linear bias init: U(-1/sqrt(fan_in), 1/sqrt(fan_in))
    bound = 1.0 / jnp.sqrt(jnp.float32(in_features))
    return jax.random.uniform(key, (1, out_features), jnp.float32, -bound, bound)


if __name__ == "__main__":
    key = jax.random.PRNGKey(0)
    k_x, k_w1, k_b1, k_wp, k_bp, k_x2 = jax.random.split(key, 6)

    batch = 8
    x = jax.random.normal(k_x, (batch, 13), jnp.float32)

    # Parameters stored as (in_features, out_features) for x @ W + b.
    w1 = _xavier_uniform(k_w1, (13, 13))
    b1 = _linear_default_bias(k_b1, 13, 13)
    wp = jax.random.uniform(k_wp, (13, 2), jnp.float32,
                            -1.0 / jnp.sqrt(13.0), 1.0 / jnp.sqrt(13.0))
    bp = _linear_default_bias(k_bp, 13, 2)

    # train phase (raw logits)
    out_train = dist_psn_13features(x, w1, b1, wp, bp, phase="train")
    jax.block_until_ready(out_train)

    # eval phase (softmax over dim=1)
    out_eval = dist_psn_13features(x, w1, b1, wp, bp, phase="eval")
    jax.block_until_ready(out_eval)

    # plain-JAX reference
    h_ref = jnp.maximum(x @ w1 + b1, 0.0)
    logits_ref = h_ref @ wp + bp
    probs_ref = jax.nn.softmax(logits_ref, axis=1)

    assert out_train.shape == (batch, 2) and out_eval.shape == (batch, 2)
    assert jnp.allclose(out_train, logits_ref, atol=1e-4)
    assert jnp.allclose(out_eval, probs_ref, atol=5e-4)
    assert jnp.allclose(jnp.sum(out_eval, axis=1), 1.0, atol=1e-3)

    # Multi-tile pipelined path with a ragged batch: exercises the tiny
    # pad-to-8, the ragged last grid block (OOB-masked writes) and the slice.
    batch2 = 300
    x2 = jax.random.normal(k_x2, (batch2, 13), jnp.float32)
    out2 = dist_psn_13features(x2, w1, b1, wp, bp, phase="train", block_rows=64)
    jax.block_until_ready(out2)
    ref2 = jnp.maximum(x2 @ w1 + b1, 0.0) @ wp + bp
    assert out2.shape == (batch2, 2)
    assert jnp.allclose(out2, ref2, atol=1e-4)

    out2e = dist_psn_13features(x2, w1, b1, wp, bp, phase="eval", block_rows=64)
    jax.block_until_ready(out2e)
    ref2e = jax.nn.softmax(ref2, axis=1)
    assert jnp.allclose(out2e, ref2e, atol=5e-4)
    assert jnp.allclose(jnp.sum(out2e, axis=1), 1.0, atol=1e-3)

    print("KERNEL_OK")
</pallas_src>

<mosaic_0001>
module attributes {stable_mosaic.version = 11 : i64} {
  func.func @_kernel_train(%arg0: i32, %arg1: memref<1x104xf32, #tpu.memory_space<vmem>>, %arg2: memref<104x104xf32, #tpu.memory_space<vmem>>, %arg3: memref<1x104xf32, #tpu.memory_space<vmem>>, %arg4: memref<104x16xf32, #tpu.memory_space<vmem>>, %arg5: memref<1x16xf32, #tpu.memory_space<vmem>>, %arg6: memref<1x16xf32, #tpu.memory_space<vmem>>) attributes {dimension_semantics = [#tpu.dimension_semantics<parallel>], iteration_bounds = array<i64: 1>, scalar_prefetch = 0 : i64, scratch_operands = 0 : i64, tpu.core_type = #tpu.core_type<tc>, window_params = [{transform_indices = @transform_0, window_bounds = array<i64: 1, 104>}, {pipeline_mode = #tpu.pipeline_mode<synchronous>, transform_indices = @transform_1, window_bounds = array<i64: 104, 104>}, {pipeline_mode = #tpu.pipeline_mode<synchronous>, transform_indices = @transform_2, window_bounds = array<i64: 1, 104>}, {pipeline_mode = #tpu.pipeline_mode<synchronous>, transform_indices = @transform_3, window_bounds = array<i64: 104, 16>}, {pipeline_mode = #tpu.pipeline_mode<synchronous>, transform_indices = @transform_4, window_bounds = array<i64: 1, 16>}, {transform_indices = @transform_5, window_bounds = array<i64: 1, 16>}]} {
    %c0 = arith.constant 0 : index
    %c0_0 = arith.constant 0 : index
    %0 = vector.load %arg1[%c0, %c0_0] : memref<1x104xf32, #tpu.memory_space<vmem>>, vector<1x104xf32>
    %c0_1 = arith.constant 0 : index
    %c0_2 = arith.constant 0 : index
    %1 = vector.load %arg2[%c0_1, %c0_2] : memref<104x104xf32, #tpu.memory_space<vmem>>, vector<104x104xf32>
    %cst = arith.constant dense<0.000000e+00> : vector<1x104xf32>
    %2 = tpu.matmul %0, %1, %cst {dimension_numbers = #tpu.dot_dimension_numbers<[1], [0], [0], [1], [0, 0, 1, 1], [], []>} : vector<1x104xf32>, vector<104x104xf32>, vector<1x104xf32> -> vector<1x104xf32>
    %c0_3 = arith.constant 0 : index
    %c0_4 = arith.constant 0 : index
    %3 = vector.load %arg3[%c0_3, %c0_4] : memref<1x104xf32, #tpu.memory_space<vmem>>, vector<1x104xf32>
    %4 = arith.addf %2, %3 : vector<1x104xf32>
    %cst_5 = arith.constant 0.000000e+00 : f32
    %5 = vector.broadcast %cst_5 : f32 to vector<1x104xf32>
    %6 = arith.maximumf %4, %5 : vector<1x104xf32>
    %c0_6 = arith.constant 0 : index
    %c0_7 = arith.constant 0 : index
    %7 = vector.load %arg4[%c0_6, %c0_7] : memref<104x16xf32, #tpu.memory_space<vmem>>, vector<104x16xf32>
    %cst_8 = arith.constant dense<0.000000e+00> : vector<1x16xf32>
    %8 = tpu.matmul %6, %7, %cst_8 {dimension_numbers = #tpu.dot_dimension_numbers<[1], [0], [0], [1], [0, 0, 1, 1], [], []>} : vector<1x104xf32>, vector<104x16xf32>, vector<1x16xf32> -> vector<1x16xf32>
    %c0_9 = arith.constant 0 : index
    %c0_10 = arith.constant 0 : index
    %9 = vector.load %arg5[%c0_9, %c0_10] : memref<1x16xf32, #tpu.memory_space<vmem>>, vector<1x16xf32>
    %10 = arith.addf %8, %9 : vector<1x16xf32>
    %c0_11 = arith.constant 0 : index
    %c0_12 = arith.constant 0 : index
    %11 = vector.load %arg6[%c0_11, %c0_12] : memref<1x16xf32, #tpu.memory_space<vmem>>, vector<1x16xf32>
    tpu.vector_store %arg6[%c0_11, %c0_12], %10 {strides = array<i32>} : memref<1x16xf32, #tpu.memory_space<vmem>>, vector<1x16xf32>,
    return
  }
  func.func @transform_0(%arg0: i32) -> (i32, i32) {
    %c0_i32 = arith.constant 0 : i32
    %c0_i32_0 = arith.constant 0 : i32
    return %arg0, %c0_i32 : i32, i32
  }
  func.func @transform_1(%arg0: i32) -> (i32, i32) {
    %c0_i32 = arith.constant 0 : i32
    %c0_i32_0 = arith.constant 0 : i32
    %c0_i32_1 = arith.constant 0 : i32
    return %c0_i32, %c0_i32_0 : i32, i32
  }
  func.func @transform_2(%arg0: i32) -> (i32, i32) {
    %c0_i32 = arith.constant 0 : i32
    %c0_i32_0 = arith.constant 0 : i32
    %c0_i32_1 = arith.constant 0 : i32
    return %c0_i32, %c0_i32_0 : i32, i32
  }
  func.func @transform_3(%arg0: i32) -> (i32, i32) {
    %c0_i32 = arith.constant 0 : i32
    %c0_i32_0 = arith.constant 0 : i32
    %c0_i32_1 = arith.constant 0 : i32
    return %c0_i32, %c0_i32_0 : i32, i32
  }
  func.func @transform_4(%arg0: i32) -> (i32, i32) {
    %c0_i32 = arith.constant 0 : i32
    %c0_i32_0 = arith.constant 0 : i32
    %c0_i32_1 = arith.constant 0 : i32
    return %c0_i32, %c0_i32_0 : i32, i32
  }
  func.func @transform_5(%arg0: i32) -> (i32, i32) {
    %c0_i32 = arith.constant 0 : i32
    %c0_i32_0 = arith.constant 0 : i32
    return %arg0, %c0_i32 : i32, i32
  }
}

</mosaic_0001>

<bundles_post_ra>
// kernel: dist_psn_13features.1
= control target key start
LH: loop header
LB: loop body
LE: loop exit
PB: predicated region body
PF: predicated region fallthrough
CT: control target
= control target key end

     0   :  { %vm35_vm0 = vcmask 850944   ;;  %vm97_vm1 = vcmask 122880   ;;  %s225_s1 = inlined_call_operand.vmem [shape: f32[104,104], index: 1, kind: input, shape index: {}]   ;;  %s226_s3 = inlined_call_operand.vmem [shape: f32[104,16], index: 3, kind: input, shape index: {}]   ;;  %s227_s0 = inlined_call_operand.vmem [shape: f32[1,104], index: 0, kind: input, shape index: {}]   ;;  %s228_s2 = inlined_call_operand.vmem [shape: f32[1,104], index: 2, kind: input, shape index: {}]   ;;  %s229_s4 = inlined_call_operand.vmem [shape: f32[1,16], index: 4, kind: input, shape index: {}]   ;;  %s230_s5 = inlined_call_operand.vmem [shape: f32[1,16], index: 5, kind: output, shape index: {}]  }
   0x1   :  { %v33_v0 = vld [vmem:[%s225_s1 + $0x60] sm:$0xff]  ;;  %v32_v1 = vld [vmem:[%s225_s1 + $0x58] sm:$0xff]  ;;  %v31_v2 = vld [vmem:[%s225_s1 + $0x50] sm:$0xff] }
   0x2   :  { %42 = vmatpush.msra.mxu0 %v33_v0  ;;  %v30_v3 = vld [vmem:[%s225_s1 + $0x48] sm:$0xff]  ;;  %v72_v4 = vld [vmem:[%s226_s3 + $0x60] sm:$0xff]  ;;  %v71_v5 = vld [vmem:[%s226_s3 + $0x58] sm:$0xff] }
   0x3   :  { %80 = vmatpush.msra.mxu1 %v72_v4  ;;  %v29_v6 = vld [vmem:[%s225_s1 + $0x40] sm:$0xff]  ;;  %v70_v7 = vld [vmem:[%s226_s3 + $0x50] sm:$0xff]  ;;  %v28_v8 = vld [vmem:[%s225_s1 + $0x38] sm:$0xff] }
   0x4   :  { %43 = vmatpush.msra.mxu0 %v32_v1  ;;  %v69_v9 = vld [vmem:[%s226_s3 + $0x48] sm:$0xff]  ;;  %v27_v10 = vld [vmem:[%s225_s1 + $0x30] sm:$0xff]  ;;  %v68_v11 = vld [vmem:[%s226_s3 + $0x40] sm:$0xff] }
   0x5   :  { %81 = vmatpush.msra.mxu1 %v71_v5  ;;  %v26_v12 = vld [vmem:[%s225_s1 + $0x28] sm:$0xff]  ;;  %v67_v13 = vld [vmem:[%s226_s3 + $0x38] sm:$0xff]  ;;  %v25_v14 = vld [vmem:[%s225_s1 + $0x20] sm:$0xff] }
   0x6   :  { %44 = vmatpush.msra.mxu0 %v31_v2  ;;  %v66_v15 = vld [vmem:[%s226_s3 + $0x30] sm:$0xff]  ;;  %v24_v16 = vld [vmem:[%s225_s1 + $0x18] sm:$0xff]  ;;  %v65_v17 = vld [vmem:[%s226_s3 + $0x28] sm:$0xff] }
   0x7   :  { %82 = vmatpush.msra.mxu1 %v70_v7  ;;  %v23_v18 = vld [vmem:[%s225_s1 + $0x10] sm:$0xff]  ;;  %v64_v19 = vld [vmem:[%s226_s3 + $0x20] sm:$0xff]  ;;  %v22_v20 = vld [vmem:[%s225_s1 + $0x8] sm:$0xff] }
   0x8   :  { %45 = vmatpush.msra.mxu0 %v30_v3  ;;  %v63_v21 = vld [vmem:[%s226_s3 + $0x18] sm:$0xff]  ;;  %v21_v22 = vld [vmem:[%s225_s1] sm:$0xff]  ;;  %v62_v24 = vld [vmem:[%s226_s3 + $0x10] sm:$0xff] }
   0x9   :  { %83 = vmatpush.msra.mxu1 %v69_v9  ;;  %v20_v23 = vld [vmem:[%s227_s0] sm:$0x1]  ;;  %v61_v25 = vld [vmem:[%s226_s3 + $0x8] sm:$0xff] }
   0xa   :  { %46 = vmatpush.msra.mxu0 %v29_v6  ;;  %v60_v26 = vld [vmem:[%s226_s3] sm:$0xff] }
   0xb   :  { %84 = vmatpush.msra.mxu1 %v68_v11  ;;  %v34_v27 = vld [vmem:[%s228_s2] sm:$0x1] }
   0xc   :  { %47 = vmatpush.msra.mxu0 %v28_v8  ;;  %v73_v31 = vld [vmem:[%s229_s4] sm:$0x1] }
   0xd   :  { %85 = vmatpush.msra.mxu1 %v67_v13 }
   0xe   :  { %48 = vmatpush.msra.mxu0 %v27_v10 }
   0xf   :  { %86 = vmatpush.msra.mxu1 %v66_v15 }
  0x10   :  { %49 = vmatpush.msra.mxu0 %v26_v12 }
  0x11   :  { %87 = vmatpush.msra.mxu1 %v65_v17 }
  0x12   :  { %50 = vmatpush.msra.mxu0 %v25_v14 }
  0x13   :  { %88 = vmatpush.msra.mxu1 %v64_v19 }
  0x14   :  { %51 = vmatpush.msra.mxu0 %v24_v16 }
  0x15   :  { %89 = vmatpush.msra.mxu1 %v63_v21 }
  0x16   :  { %52 = vmatpush.msra.mxu0 %v23_v18 }
  0x17   :  { %90 = vmatpush.msra.mxu1 %v62_v24 }
  0x18   :  { %53 = vmatpush.msra.mxu0 %v22_v20 }
  0x19   :  { %91 = vmatpush.msra.mxu1 %v61_v25 }
  0x1a   :  { %54 = vmatpush.msra.mxu0 %v21_v22 }
  0x1b   :  { %103 = vmatmul.msk.f32.vlgmr.msra.gmra.mxu0 %vm35_vm0, %v20_v23  ;;  %92 = vmatpush.msra.mxu1 %v60_v26 }
  0x98   :  { %v56_v28 = vpop.f32.mrf.mxu0 }
  0x99   :  { %v57_v29 = vadd.f32 %v56_v28, %v34_v27 }
  0x9b   :  { %v59_v30 = vmax.f32 %v57_v29, 0.0 }
  0x9d   :  { %104 = vmatmul.msk.f32.vlgmr.msra.gmra.mxu1 %vm35_vm0, %v59_v30 }
 0x11a   :  { %v94_v32 = vpop.f32.mrf.mxu1 }
 0x11b   :  { %v95_v33 = vadd.f32 %v94_v32, %v73_v31 }
 0x11d   :  { %98 = vst.msk [vmem:[%s230_s5] sm:$0x1] %vm97_vm1, %v95_v33 }

</bundles_post_ra>
